<compile_context>
chip_gen: v7x
topology: tpu7x:2x2x1
jax: 0.10.0
libtpu: 0.0.40
codegen_flags: <defaults>
</compile_context>

<pallas_src>
import functools

import jax
import jax.numpy as jnp
from jax.experimental import pallas as pl
from jax.experimental.pallas import tpu as pltpu


def _round_up(x: int, m: int) -> int:
    return (x + m - 1) // m * m


def _mmd_tri_kernel(rows_ref, cols_ref, inv_bw_ref, x_ref, y_ref,
                    xsq_ref, ysq_ref, rsgn_ref, csgn_ref, out_ref, *,
                    kernel_mul, kernel_num):
    """Signed multi-bandwidth kernel sum over one (row-block, col-block) tile
    of the upper block-triangle of K(total, total)."""
    t = pl.program_id(0)

    x = x_ref[...]                                   # (tile, D) bf16 (or f32)
    y = y_ref[...]                                   # (tile, D)
    # Pairwise squared distances: ||x||^2 + ||y||^2 - 2 x.y ; the transpose is
    # folded into the contraction dims so the MXU consumes y directly.
    gram = jax.lax.dot_general(
        x, y, dimension_numbers=(((1,), (1,)), ((), ())),
        preferred_element_type=jnp.float32)          # (tile, tile) f32
    l2 = xsq_ref[...] + ysq_ref[...] - 2.0 * gram    # (tile,1)+(1,tile)-(...)
    neg_l2 = -jnp.maximum(l2, 0.0)                   # clamp FP cancellation

    if kernel_mul == 2.0:
        # One EUP exp at the LARGEST bandwidth; every halving of the bandwidth
        # doubles the exponent, i.e. squares the previous term (VPU only).
        term = jnp.exp(neg_l2 * inv_bw_ref[kernel_num - 1])
        kern = term
        for _ in range(kernel_num - 1):
            term = term * term
            kern = kern + term
    else:
        kern = jnp.exp(neg_l2 * inv_bw_ref[0])
        for k in range(1, kernel_num):
            kern = kern + jnp.exp(neg_l2 * inv_bw_ref[k])
    # TODO(synk): optional bf16 exp/squaring chain (v6e/v7x) not used -- the
    # repeated squaring compounds bf16 error too much for tight tolerances.

    # Signed reduction: lane reduce (XLU) against the +/-1/0 column signs,
    # then the +/-1/0 row signs, then a scalar.  Off-diagonal tri tiles
    # represent two symmetric tiles of the full matrix -> weight 2.
    part = jnp.sum(kern * csgn_ref[...], axis=-1, keepdims=True)   # (tile, 1)
    tile_sum = jnp.sum(part * rsgn_ref[...])
    weight = jnp.where(rows_ref[t] == cols_ref[t], 1.0, 2.0)

    sub = jax.lax.broadcasted_iota(jnp.int32, out_ref.shape, 1)
    lane = jax.lax.broadcasted_iota(jnp.int32, out_ref.shape, 2)
    out_ref[...] = jnp.where((sub == 0) & (lane == 0),
                             tile_sum * weight, 0.0).astype(out_ref.dtype)


def mmd_loss(source, target, *, kernel_mul=2.0, kernel_num=5, loss_weight=1.0,
             compute_dtype=jnp.bfloat16, max_tile_rows=None):
    """MMD loss matching PyTorch MMDLoss.forward.  source/target: (B, D)."""
    assert source.shape == target.shape and source.ndim == 2
    b, d = source.shape
    n = 2 * b
    kernel_mul = float(kernel_mul)
    kernel_num = int(kernel_num)

    d_pad = _round_up(d, 128)
    esize = jnp.dtype(compute_dtype).itemsize

    # ---- VMEM budget / tile selection --------------------------------------
    try:
        vmem_cap = int(pltpu.get_tpu_info().vmem_capacity_bytes)
        if vmem_cap <= 0:
            vmem_cap = 64 << 20
    except Exception:
        vmem_cap = 64 << 20                 # conservative default (v7x per-core)
    vmem_cap = max(min(vmem_cap, 128 << 20), 32 << 20)
    budget = int(vmem_cap * 0.70)           # headroom for compiler scratch

    def _est_vmem(t):
        blocks = 2 * (2 * t * d_pad * esize)   # row + col blocks, double-buffered
        vecs = 4 * (2 * t * 4)                 # sq / sign vectors, double-buffered
        temps = 6 * t * t * 4                  # gram / l2 / kern f32 temporaries
        return blocks + vecs + temps + 2 * 8 * 128 * 4

    max_tile = 1024 if max_tile_rows is None else max(int(max_tile_rows), 16)
    if n <= min(256, max_tile):
        tile = max(_round_up(n, 16), 16)       # one square tile covers everything
        n_pad = tile
    else:
        cands = [c for c in (1024, 512, 256, 128) if c <= max_tile] or [128]
        tile = cands[-1]
        for c in cands:                        # largest candidate fitting budget
            if _est_vmem(c) <= budget:
                tile = c
                break
        # Keep >= 2 row tiles so the "parallel" tri axis can span both v7x cores.
        while tile > 128 and 2 * tile > _round_up(n, 128):
            tile //= 2
        n_pad = _round_up(n, tile)
    gr = n_pad // tile
    # TODO(synk): for very large D a K-tiled grid axis with an f32 gram scratch
    # would keep row/col tiles large at bounded VMEM; not needed at these sizes.

    # ---- Data prep (padding, bf16 rounding, norms, bandwidth, signs) --------
    src = source.astype(jnp.float32)
    tgt = target.astype(jnp.float32)
    total = jnp.zeros((n_pad, d_pad), jnp.float32)
    total = total.at[:b, :d].set(src)
    total = total.at[b:n, :d].set(tgt)
    total_lp = total.astype(compute_dtype)          # streamed (bf16) matrix
    total_r = total_lp.astype(jnp.float32)          # rounded values for stats

    # Row norms from the *rounded* values: the distance-matrix diagonal then
    # cancels exactly against the MXU gram (no bf16 cancellation bias).
    row_sq = jnp.sum(total_r * total_r, axis=1)     # padded rows are 0
    sq_col = row_sq[:, None]                        # (n_pad, 1)
    sq_row = row_sq[None, :]                        # (1, n_pad)

    # Bandwidth from O(N*D) statistics (no N x N pass):
    #   sum_ij ||xi-xj||^2 = 2*N*sum_i ||xi||^2 - 2*||sum_i xi||^2
    sumsq = jnp.sum(row_sq)
    colsum = jnp.sum(total_r, axis=0)
    sum_l2 = 2.0 * n * sumsq - 2.0 * jnp.sum(colsum * colsum)
    bandwidth = sum_l2 / float(n * n - n)
    bandwidth = bandwidth / (kernel_mul ** (kernel_num // 2))
    # TODO(synk): no guard for bandwidth == 0 (identical inputs) -- same
    # inf/nan behavior as the PyTorch module.
    inv_bw = (1.0 / (bandwidth *
                     kernel_mul ** jnp.arange(kernel_num, dtype=jnp.float32))
              ).astype(jnp.float32)

    # +/-1 quadrant sign (XX,YY -> +1 ; XY,YX -> -1), 0 on padded rows/cols.
    idx = jnp.arange(n_pad)
    sgn = (jnp.where(idx < b, 1.0, -1.0)
           * (idx < n).astype(jnp.float32)).astype(jnp.float32)
    sgn_col = sgn[:, None]                          # (n_pad, 1)
    sgn_row = sgn[None, :]                          # (1, n_pad)

    # Upper block-triangle enumeration (row-major so the row block stays
    # VMEM-resident across consecutive grid steps).
    rows_l, cols_l = [], []
    for i in range(gr):
        for j in range(i, gr):
            rows_l.append(i)
            cols_l.append(j)
    n_tri = len(rows_l)
    rows = jnp.asarray(rows_l, jnp.int32)
    cols = jnp.asarray(cols_l, jnp.int32)

    kernel = functools.partial(_mmd_tri_kernel, kernel_mul=kernel_mul,
                               kernel_num=kernel_num)

    n_exp = 1 if kernel_mul == 2.0 else kernel_num
    cost = pl.CostEstimate(
        flops=int(n_tri * (2 * tile * tile * d_pad + 12 * tile * tile)),
        transcendentals=int(n_exp * n_tri * tile * tile),
        bytes_accessed=int((n_tri + gr) * tile * d_pad * esize
                           + n_tri * 8 * 128 * 4),
    )
    vmem_limit = int(min(vmem_cap, max(_est_vmem(tile) + (16 << 20), 32 << 20)))

    grid_spec = pltpu.PrefetchScalarGridSpec(
        num_scalar_prefetch=3,              # rows, cols, inv_bw live in SMEM
        grid=(n_tri,),
        in_specs=[
            pl.BlockSpec((tile, d_pad), lambda t, r, c, bw: (r[t], 0)),  # row blk
            pl.BlockSpec((tile, d_pad), lambda t, r, c, bw: (c[t], 0)),  # col blk
            pl.BlockSpec((tile, 1), lambda t, r, c, bw: (r[t], 0)),      # ||x||^2
            pl.BlockSpec((1, tile), lambda t, r, c, bw: (0, c[t])),      # ||y||^2
            pl.BlockSpec((tile, 1), lambda t, r, c, bw: (r[t], 0)),      # row sign
            pl.BlockSpec((1, tile), lambda t, r, c, bw: (0, c[t])),      # col sign
        ],
        out_specs=pl.BlockSpec((1, 8, 128), lambda t, r, c, bw: (t, 0, 0)),
    )

    partials = pl.pallas_call(
        kernel,
        out_shape=jax.ShapeDtypeStruct((n_tri, 8, 128), jnp.float32),
        grid_spec=grid_spec,
        compiler_params=pltpu.CompilerParams(
            dimension_semantics=("parallel",),
            vmem_limit_bytes=vmem_limit),
        cost_estimate=cost,
    )(rows, cols, inv_bw, total_lp, total_lp, sq_col, sq_row, sgn_col, sgn_row)

    # Only [t, 0, 0] of each output block is non-zero -> summing everything is
    # unambiguous and cheap.
    signed_sum = jnp.sum(partials)
    return signed_sum * (float(loss_weight) / float(b * b))


def _mmd_loss_ref(source, target, *, kernel_mul=2.0, kernel_num=5,
                  loss_weight=1.0):
    """Pure-JAX reference mirroring the PyTorch module (diff**2 formulation)."""
    b = source.shape[0]
    total = jnp.concatenate([source, target], axis=0).astype(jnp.float32)
    n = total.shape[0]
    diff = total[None, :, :] - total[:, None, :]
    l2 = jnp.sum(diff * diff, axis=2)
    bandwidth = jnp.sum(l2) / (n * n - n)
    bandwidth = bandwidth / (kernel_mul ** (kernel_num // 2))
    kernels = sum(jnp.exp(-l2 / (bandwidth * kernel_mul ** i))
                  for i in range(kernel_num))
    xx = kernels[:b, :b]
    yy = kernels[b:, b:]
    xy = kernels[:b, b:]
    yx = kernels[b:, :b]
    return jnp.mean(xx + yy - xy - yx) * loss_weight


if __name__ == "__main__":
    key = jax.random.PRNGKey(0)
    k1, k2, k3, k4, k5, k6 = jax.random.split(key, 6)

    # Case 1: small shapes consistent with the module (B=8 -> N=16, D=32).
    B, D = 8, 32
    source = jax.random.normal(k1, (B, D), dtype=jnp.float32)
    target = jax.random.normal(k2, (B, D), dtype=jnp.float32) + 0.5
    loss = jax.block_until_ready(mmd_loss(source, target))
    ref = jax.block_until_ready(_mmd_loss_ref(source, target))
    # rtol 2e-3: the bf16-streamed gram carries ~1e-4 relative error here.
    assert jnp.allclose(loss, ref, rtol=2e-3, atol=1e-5), (loss, ref)

    # Case 2: odd shapes exercising row / feature padding + sign masking.
    B2, D2 = 5, 20
    s2 = jax.random.normal(k3, (B2, D2), dtype=jnp.float32)
    t2 = jax.random.normal(k4, (B2, D2), dtype=jnp.float32) - 0.3
    loss2 = jax.block_until_ready(mmd_loss(s2, t2))
    ref2 = jax.block_until_ready(_mmd_loss_ref(s2, t2))
    assert jnp.allclose(loss2, ref2, rtol=2e-3, atol=1e-5), (loss2, ref2)

    # Case 3: forces the multi-tile triangular path (2 row blocks -> 3 tri
    # tiles, off-diagonal weight 2, prefetched block-index tables).
    B3, D3 = 128, 32
    s3 = jax.random.normal(k5, (B3, D3), dtype=jnp.float32)
    t3 = jax.random.normal(k6, (B3, D3), dtype=jnp.float32) + 0.5
    loss3 = jax.block_until_ready(mmd_loss(s3, t3, max_tile_rows=128))
    ref3 = jax.block_until_ready(_mmd_loss_ref(s3, t3))
    assert jnp.allclose(loss3, ref3, rtol=2e-3, atol=1e-5), (loss3, ref3)

    print("KERNEL_OK")
</pallas_src>

<mosaic_0001>
module attributes {stable_mosaic.version = 11 : i64} {
  func.func @_mmd_tri_kernel(%arg0: i32, %arg1: memref<1xi32, #tpu.memory_space<smem>>, %arg2: memref<1xi32, #tpu.memory_space<smem>>, %arg3: memref<5xf32, #tpu.memory_space<smem>>, %arg4: memref<16x128xbf16, #tpu.memory_space<vmem>>, %arg5: memref<16x128xbf16, #tpu.memory_space<vmem>>, %arg6: memref<16x1xf32, #tpu.memory_space<vmem>>, %arg7: memref<1x16xf32, #tpu.memory_space<vmem>>, %arg8: memref<16x1xf32, #tpu.memory_space<vmem>>, %arg9: memref<1x16xf32, #tpu.memory_space<vmem>>, %arg10: memref<1x8x128xf32, #tpu.memory_space<vmem>>) attributes {dimension_semantics = [#tpu.dimension_semantics<parallel>], iteration_bounds = array<i64: 1>, scalar_prefetch = 3 : i64, scratch_operands = 0 : i64, tpu.core_type = #tpu.core_type<tc>, window_params = [{transform_indices = @transform_0, window_bounds = array<i64: 16, 128>}, {transform_indices = @transform_1, window_bounds = array<i64: 16, 128>}, {transform_indices = @transform_2, window_bounds = array<i64: 16, 1>}, {transform_indices = @transform_3, window_bounds = array<i64: 1, 16>}, {transform_indices = @transform_4, window_bounds = array<i64: 16, 1>}, {transform_indices = @transform_5, window_bounds = array<i64: 1, 16>}, {transform_indices = @transform_6, window_bounds = array<i64: 1, 8, 128>}]} {
    %c0 = arith.constant 0 : index
    %c0_0 = arith.constant 0 : index
    %0 = vector.load %arg4[%c0, %c0_0] : memref<16x128xbf16, #tpu.memory_space<vmem>>, vector<16x128xbf16>
    %c0_1 = arith.constant 0 : index
    %c0_2 = arith.constant 0 : index
    %1 = vector.load %arg5[%c0_1, %c0_2] : memref<16x128xbf16, #tpu.memory_space<vmem>>, vector<16x128xbf16>
    %cst = arith.constant dense<0.000000e+00> : vector<16x16xf32>
    %2 = tpu.matmul %0, %1, %cst {dimension_numbers = #tpu.dot_dimension_numbers<[1], [1], [0], [0], [0, 0, 1, 0], [], []>} : vector<16x128xbf16>, vector<16x128xbf16>, vector<16x16xf32> -> vector<16x16xf32>
    %c0_3 = arith.constant 0 : index
    %c0_4 = arith.constant 0 : index
    %3 = vector.load %arg6[%c0_3, %c0_4] : memref<16x1xf32, #tpu.memory_space<vmem>>, vector<16x1xf32>
    %c0_5 = arith.constant 0 : index
    %c0_6 = arith.constant 0 : index
    %4 = vector.load %arg7[%c0_5, %c0_6] : memref<1x16xf32, #tpu.memory_space<vmem>>, vector<1x16xf32>
    %5 = vector.broadcast %3 : vector<16x1xf32> to vector<16x16xf32>
    %6 = vector.broadcast %4 : vector<1x16xf32> to vector<16x16xf32>
    %7 = arith.addf %5, %6 : vector<16x16xf32>
    %cst_7 = arith.constant 2.000000e+00 : f32
    %8 = vector.broadcast %cst_7 : f32 to vector<16x16xf32>
    %9 = arith.mulf %8, %2 : vector<16x16xf32>
    %10 = arith.subf %7, %9 : vector<16x16xf32>
    %cst_8 = arith.constant 0.000000e+00 : f32
    %11 = vector.broadcast %cst_8 : f32 to vector<16x16xf32>
    %12 = arith.maximumf %10, %11 : vector<16x16xf32>
    %cst_9 = arith.constant 0.000000e+00 : f32
    %13 = vector.broadcast %cst_9 : f32 to vector<16x16xf32>
    %14 = arith.subf %13, %12 : vector<16x16xf32>
    %c4 = arith.constant 4 : index
    %15 = memref.load %arg3[%c4] : memref<5xf32, #tpu.memory_space<smem>>
    %16 = vector.broadcast %15 : f32 to vector<16x16xf32>
    %17 = arith.mulf %14, %16 : vector<16x16xf32>
    %18 = math.exp %17 : vector<16x16xf32>
    %19 = arith.mulf %18, %18 : vector<16x16xf32>
    %20 = arith.addf %18, %19 : vector<16x16xf32>
    %21 = arith.mulf %19, %19 : vector<16x16xf32>
    %22 = arith.addf %20, %21 : vector<16x16xf32>
    %23 = arith.mulf %21, %21 : vector<16x16xf32>
    %24 = arith.addf %22, %23 : vector<16x16xf32>
    %25 = arith.mulf %23, %23 : vector<16x16xf32>
    %26 = arith.addf %24, %25 : vector<16x16xf32>
    %c0_10 = arith.constant 0 : index
    %c0_11 = arith.constant 0 : index
    %27 = vector.load %arg9[%c0_10, %c0_11] : memref<1x16xf32, #tpu.memory_space<vmem>>, vector<1x16xf32>
    %28 = vector.broadcast %27 : vector<1x16xf32> to vector<16x16xf32>
    %29 = arith.mulf %26, %28 : vector<16x16xf32>
    %cst_12 = arith.constant dense<0.000000e+00> : vector<16xf32>
    %30 = vector.multi_reduction <add>, %29, %cst_12 [1] : vector<16x16xf32> to vector<16xf32>
    %31 = vector.shape_cast %30 : vector<16xf32> to vector<16x1xf32>
    %c0_13 = arith.constant 0 : index
    %c0_14 = arith.constant 0 : index
    %32 = vector.load %arg8[%c0_13, %c0_14] : memref<16x1xf32, #tpu.memory_space<vmem>>, vector<16x1xf32>
    %33 = arith.mulf %31, %32 : vector<16x1xf32>
    %34 = vector.shape_cast %33 : vector<16x1xf32> to vector<1x16x1xf32>
    %cst_15 = arith.constant dense<0.000000e+00> : vector<1xf32>
    %35 = vector.multi_reduction <add>, %34, %cst_15 [1, 2] : vector<1x16x1xf32> to vector<1xf32>
    %36 = vector.shape_cast %35 : vector<1xf32> to vector<1x1x1xf32>
    %37 = vector.extract %36[0, 0, 0] : f32 from vector<1x1x1xf32>
    %38 = arith.index_cast %arg0 : i32 to index
    %39 = memref.load %arg1[%38] : memref<1xi32, #tpu.memory_space<smem>>
    %40 = arith.index_cast %arg0 : i32 to index
    %41 = memref.load %arg2[%40] : memref<1xi32, #tpu.memory_space<smem>>
    %42 = arith.cmpi eq, %39, %41 : i32
    %cst_16 = arith.constant 1.000000e+00 : f32
    %cst_17 = arith.constant 2.000000e+00 : f32
    %43 = arith.select %42, %cst_16, %cst_17 : f32
    %44 = tpu.iota {dimensions = array<i32: 1>} : vector<1x8x128xi32>
    %45 = tpu.iota {dimensions = array<i32: 2>} : vector<1x8x128xi32>
    %c0_i32 = arith.constant 0 : i32
    %46 = vector.broadcast %c0_i32 : i32 to vector<1x8x128xi32>
    %47 = arith.cmpi eq, %44, %46 : vector<1x8x128xi32>
    %c0_i32_18 = arith.constant 0 : i32
    %48 = vector.broadcast %c0_i32_18 : i32 to vector<1x8x128xi32>
    %49 = arith.cmpi eq, %45, %48 : vector<1x8x128xi32>
    %50 = arith.andi %47, %49 : vector<1x8x128xi1>
    %51 = arith.mulf %37, %43 : f32
    %cst_19 = arith.constant 0.000000e+00 : f32
    %52 = vector.broadcast %51 : f32 to vector<1x8x128xf32>
    %53 = vector.broadcast %cst_19 : f32 to vector<1x8x128xf32>
    %54 = arith.select %50, %52, %53 : vector<1x8x128xi1>, vector<1x8x128xf32>
    %c0_20 = arith.constant 0 : index
    %c0_21 = arith.constant 0 : index
    %c0_22 = arith.constant 0 : index
    %55 = vector.load %arg10[%c0_20, %c0_21, %c0_22] : memref<1x8x128xf32, #tpu.memory_space<vmem>>, vector<1x8x128xf32>
    tpu.vector_store %arg10[%c0_20, %c0_21, %c0_22], %54 {strides = array<i32>} : memref<1x8x128xf32, #tpu.memory_space<vmem>>, vector<1x8x128xf32>,
    return
  }
  func.func @transform_0(%arg0: i32, %arg1: memref<1xi32, #tpu.memory_space<smem>>, %arg2: memref<1xi32, #tpu.memory_space<smem>>, %arg3: memref<5xf32, #tpu.memory_space<smem>>) -> (i32, i32) {
    %0 = arith.index_cast %arg0 : i32 to index
    %1 = memref.load %arg1[%0] : memref<1xi32, #tpu.memory_space<smem>>
    %c0_i32 = arith.constant 0 : i32
    %c0_i32_0 = arith.constant 0 : i32
    return %1, %c0_i32 : i32, i32
  }
  func.func @transform_1(%arg0: i32, %arg1: memref<1xi32, #tpu.memory_space<smem>>, %arg2: memref<1xi32, #tpu.memory_space<smem>>, %arg3: memref<5xf32, #tpu.memory_space<smem>>) -> (i32, i32) {
    %0 = arith.index_cast %arg0 : i32 to index
    %1 = memref.load %arg2[%0] : memref<1xi32, #tpu.memory_space<smem>>
    %c0_i32 = arith.constant 0 : i32
    %c0_i32_0 = arith.constant 0 : i32
    return %1, %c0_i32 : i32, i32
  }
  func.func @transform_2(%arg0: i32, %arg1: memref<1xi32, #tpu.memory_space<smem>>, %arg2: memref<1xi32, #tpu.memory_space<smem>>, %arg3: memref<5xf32, #tpu.memory_space<smem>>) -> (i32, i32) {
    %0 = arith.index_cast %arg0 : i32 to index
    %1 = memref.load %arg1[%0] : memref<1xi32, #tpu.memory_space<smem>>
    %c0_i32 = arith.constant 0 : i32
    %c0_i32_0 = arith.constant 0 : i32
    return %1, %c0_i32 : i32, i32
  }
  func.func @transform_3(%arg0: i32, %arg1: memref<1xi32, #tpu.memory_space<smem>>, %arg2: memref<1xi32, #tpu.memory_space<smem>>, %arg3: memref<5xf32, #tpu.memory_space<smem>>) -> (i32, i32) {
    %0 = arith.index_cast %arg0 : i32 to index
    %1 = memref.load %arg2[%0] : memref<1xi32, #tpu.memory_space<smem>>
    %c0_i32 = arith.constant 0 : i32
    %c0_i32_0 = arith.constant 0 : i32
    return %c0_i32, %1 : i32, i32
  }
  func.func @transform_4(%arg0: i32, %arg1: memref<1xi32, #tpu.memory_space<smem>>, %arg2: memref<1xi32, #tpu.memory_space<smem>>, %arg3: memref<5xf32, #tpu.memory_space<smem>>) -> (i32, i32) {
    %0 = arith.index_cast %arg0 : i32 to index
    %1 = memref.load %arg1[%0] : memref<1xi32, #tpu.memory_space<smem>>
    %c0_i32 = arith.constant 0 : i32
    %c0_i32_0 = arith.constant 0 : i32
    return %1, %c0_i32 : i32, i32
  }
  func.func @transform_5(%arg0: i32, %arg1: memref<1xi32, #tpu.memory_space<smem>>, %arg2: memref<1xi32, #tpu.memory_space<smem>>, %arg3: memref<5xf32, #tpu.memory_space<smem>>) -> (i32, i32) {
    %0 = arith.index_cast %arg0 : i32 to index
    %1 = memref.load %arg2[%0] : memref<1xi32, #tpu.memory_space<smem>>
    %c0_i32 = arith.constant 0 : i32
    %c0_i32_0 = arith.constant 0 : i32
    return %c0_i32, %1 : i32, i32
  }
  func.func @transform_6(%arg0: i32, %arg1: memref<1xi32, #tpu.memory_space<smem>>, %arg2: memref<1xi32, #tpu.memory_space<smem>>, %arg3: memref<5xf32, #tpu.memory_space<smem>>) -> (i32, i32, i32) {
    %c0_i32 = arith.constant 0 : i32
    %c0_i32_0 = arith.constant 0 : i32
    %c0_i32_1 = arith.constant 0 : i32
    return %arg0, %c0_i32, %c0_i32_0 : i32, i32, i32
  }
}

</mosaic_0001>

<bundles_post_ra>
// kernel: tpu_custom_call.1
= control target key start
LH: loop header
LB: loop body
LE: loop exit
PB: predicated region body
PF: predicated region fallthrough
CT: control target
= control target key end

     0   :  { %s545_s0 = inlined_call_operand.<no memory space> [shape: s32[1], index: 0, kind: input, shape index: {}]   ;;  %s546_s1 = inlined_call_operand.<no memory space> [shape: s32[1], index: 1, kind: input, shape index: {}]   ;;  %s547_s2 = inlined_call_operand.vmem [shape: f32[5], index: 2, kind: input, shape index: {}]   ;;  %s548_s3 = inlined_call_operand.vmem [shape: bf16[16,128], index: 3, kind: input, shape index: {}]   ;;  %s549_s4 = inlined_call_operand.vmem [shape: bf16[16,128], index: 4, kind: input, shape index: {}]   ;;  %s550_s5 = inlined_call_operand.vmem [shape: f32[16,1], index: 5, kind: input, shape index: {}]   ;;  %s551_s6 = inlined_call_operand.vmem [shape: f32[1,16], index: 6, kind: input, shape index: {}]   ;;  %s552_s7 = inlined_call_operand.vmem [shape: f32[16,1], index: 7, kind: input, shape index: {}]   ;;  %s553_s8 = inlined_call_operand.vmem [shape: f32[1,16], index: 8, kind: input, shape index: {}]   ;;  %s554_s9 = inlined_call_operand.hbm [shape: f32[1,8,128], index: 9, kind: output, shape index: {}]  }
   0x1   :  { %s16_s11 = sshll.u32 %s547_s2, 4  ;;  %s17_s11 = int_to_ptr.vmem [resolvable:$true] %s16_s11 }
   0x2   :  { %s389_s12 = scalar_lea.vmem %s17_s11, 16  ;;  %p394_p1 = scmp.lt.s32.totalorder %s17_s11, %s17_s11 }
   0x3   :  { %p390_p0 = scmp.ne.s32.totalorder %s17_s11, %s389_s12  ;;  %p395_p2 = scmp.lt.s32.totalorder %s389_s12, %s389_s12 }
   0x5   :  { %p396_p3 = por %p395_p2, %p394_p1 }
   0x7   :  { %p397_p4 = pnand %p396_p3, %p390_p0 }
   0x9   :  { %400 = shalt.err (!%p397_p4)  }
   0xa   :  { %s427_s13 = smov [#allocation5]  }
   0xb   :  { %19 = dma.vmem_to_smem %s17_s11, 16, %s427_s13, [#allocation2] }
   0xc   :  { %423 = dma.done.wait [#allocation2], 16 }
   0xd   :  { %424 = vsyncadd [#allocation2], 4294967280 }
   0xe   :  { %21 = sfence }
   0xf   :  { %s356_s16 = sshll.u32 %s546_s1, 1  ;;  %s354_s2 = sshll.u32 %s545_s0, 1  ;;  %v428_v0 = vmov 0.0   ;;  %vm429_vm0 = vmmov 0  }
  0x10   :  { %369 = vmatprep.subr.bf16.mxu0 %v428_v0  ;;  %p119_p5 = scmp.lt.s32.totalorder %s356_s16, 1  ;;  %371 = vmatprep.mubr.msk.bf16.mxu0 %vm429_vm0, %v428_v0  ;;  %p111_p6 = scmp.lt.s32.totalorder %s354_s2, 1 }
  0x11   :  { %22 = vsyncpa [#allocation7], 0  ;;  %v430_v1 = vmov 0   ;;  %p134_p7 = scmp.lt.s32.totalorder %s546_s1, 0  ;;  %s365_s15 = sld [smem:[#allocation5 + $0x4]]  ;;  %vm271_vm1 = vcmask 130048  }
  0x12   :  { %382 = vset.pattern.permute.xlu0 %v430_v1  ;;  %s556_s16 = smov (!%p119_p5, %s356_s16), 1  ;;  %s558_s2 = smov (!%p111_p6, %s354_s2), 1  ;;  %vm282_vm2 = vcmask 7168  }
  0x13   :  { %s357_s19 = sshll.u32 %s556_s16, 2  ;;  %s355_s23 = sshll.u32 %s558_s2, 2 }
  0x14   :  { %s122_s22 = scalar_lea.vmem %s549_s4, %s357_s19  ;;  %s114_s26 = scalar_lea.vmem %s548_s3, %s355_s23 }
  0x15   :  { %v383_v2 = vld [vmem:[%s122_s22] sm:$0xff]   ;;  %s359_s27 = sshll.u32 %s558_s2, 3  ;;  %p297_p8 = scmp.eq.s32.totalorder %s545_s0, %s546_s1 }
  0x16   :  { %s130_s30 = scalar_lea.vmem %s550_s5, %s359_s27  ;;  %370 = vmatpush3.bf16.xpose.msra.mxu0 %v383_v2  ;;  %v384_v5 = vld [vmem:[%s114_s26] sm:$0xff]   ;;  %s143_s19 = scalar_lea.vmem %s552_s7, %s359_s27 }
  0x17   :  { %v209_v3 = vld [vmem:[%s130_s30] sm:$0xff]  ;;  %v210_v4 = vld [vmem:[%s130_s30 + $0x8] sm:$0xff]  ;;  %s512_s3 = scalar_select %p134_p7, %s546_s1, 0  ;;  %v239_v20 = vstv %s365_s15 }
  0x18   :  { %214 = vperm.xlu0 %382, %v209_v3   ;;  %v278_v51 = vld [vmem:[%s143_s19] sm:$0xff]  ;;  %v279_v53 = vld [vmem:[%s143_s19 + $0x8] sm:$0xff]  ;;  %v299_v3 = vlaneseq  ;;  %s298_s22 = scalar_select %p297_p8, 1.0, 2.0 }
  0x19   :  { %s136_s5 = scalar_lea.vmem %s551_s6, %s512_s3  ;;  %s149_s17 = scalar_lea.vmem %s553_s8, %s512_s3 }
  0x1a   :  { %v364_v7 = vld [vmem:[%s136_s5] ss:$0 sm:$0xff]  ;;  %s431_s24 = smov [#allocation6]  }
  0x1b   :  { %v366_v42 = vld [vmem:[%s149_s17] ss:$0 sm:$0xff]  ;;  %s316_s25 = sshll.u32 %s431_s24, 4  ;;  %s317_s25 = int_to_ptr.vmem [resolvable:$true] %s316_s25 }
  0x1c   :  { %219 = vperm.xlu0 %382, %v210_v4   ;;  %v300_v4 = vshrl.u32 %v299_v3, 7  ;;  %s401_s27 = scalar_lea.vmem %s317_s25, 128  ;;  %p406_p10 = scmp.lt.s32.totalorder %s317_s25, %s317_s25 }
  0x1d   :  { %372 = vmatmul.mubr.bf16.vlgmr.msra.gmra.mrb[0].mxu0 %v384_v5  ;;  %v302_v5 = vand.u32 127, %v299_v3  ;;  %p402_p9 = scmp.ne.s32.totalorder %s317_s25, %s401_s27  ;;  %p407_p11 = scmp.lt.s32.totalorder %s401_s27, %s401_s27 }
  0x1e   :  { %vm303_vm3 = vcmp.eq.s32.totalorder %v300_v4, 0 }
  0x1f   :  { %vm304_vm4 = vcmp.eq.s32.totalorder %v302_v5, 0  ;;  %p408_p12 = por %p407_p11, %p406_p10 }
  0x20   :  { %vm305_vm5 = vmand %vm303_vm3, %vm304_vm4 }
  0x21   :  { %p409_p13 = pnand %p408_p12, %p402_p9 }
  0x97   :  { %v215_v6 = vpop.permute.xlu0 %214 }
  0x98   :  { %v228_v8 = vadd.f32 %v364_v7, %v215_v6 }
  0x9b   :  { %v220_v9 = vpop.permute.xlu0 %219 }
  0x9c   :  { %v229_v14 = vadd.f32 %v364_v7, %v220_v9 }
  0xf0   :  { %v202_v10 = vpop.f32.mrb[0].mxu0 }
  0xf1   :  { %v230_v11 = vmul.f32 2.0, %v202_v10  ;;  %v373_v12 = vpop.f32.mrb[1].mxu0 }
  0xf2   :  { %v205_v13 = vpop.f32.mrb[2].mxu0 }
  0xf3   :  { %v232_v15 = vsub.f32 %v228_v8, %v230_v11  ;;  %v231_v16 = vmul.f32 2.0, %v205_v13  ;;  %v374_v17 = vpop.f32.mrb[3].mxu0 }
  0xf5   :  { %v234_v18 = vmax.f32 %v232_v15, 0.0  ;;  %v233_v19 = vsub.f32 %v229_v14, %v231_v16 }
  0xf7   :  { %v236_v21 = vsub.f32 0.0, %v234_v18  ;;  %v235_v22 = vmax.f32 %v233_v19, 0.0 }
  0xf9   :  { %v240_v23 = vmul.f32 %v239_v20, %v236_v21  ;;  %v237_v24 = vsub.f32 0.0, %v235_v22 }
  0xfb   :  { %v242_v25 = vmul.f32 1.442695, %v240_v23  ;;  %v241_v26 = vmul.f32 %v239_v20, %v237_v24 }
  0xfd   :  { %385 = vpow2.f32 %v242_v25  ;;  %v244_v27 = vmul.f32 1.442695, %v241_v26 }
  0xff   :  { %387 = vpow2.f32 %v244_v27 }
 0x107   :  { %v386_v28 = vpop.eup %385 }
 0x108   :  { %v246_v29 = vmul.f32 %v386_v28, %v386_v28 }
 0x109   :  { %v388_v30 = vpop.eup %387 }
 0x10a   :  { %v248_v31 = vadd.f32 %v386_v28, %v246_v29  ;;  %v250_v32 = vmul.f32 %v246_v29, %v246_v29  ;;  %v247_v33 = vmul.f32 %v388_v30, %v388_v30 }
 0x10c   :  { %v252_v34 = vadd.f32 %v250_v32, %v248_v31  ;;  %v254_v35 = vmul.f32 %v250_v32, %v250_v32  ;;  %v249_v36 = vadd.f32 %v388_v30, %v247_v33  ;;  %v251_v37 = vmul.f32 %v247_v33, %v247_v33 }
 0x10e   :  { %v256_v38 = vadd.f32 %v254_v35, %v252_v34  ;;  %v258_v39 = vmul.f32 %v254_v35, %v254_v35  ;;  %v253_v40 = vadd.f32 %v251_v37, %v249_v36  ;;  %v255_v41 = vmul.f32 %v251_v37, %v251_v37 }
 0x110   :  { %v260_v43 = vadd.f32 %v258_v39, %v256_v38  ;;  %v257_v44 = vadd.f32 %v255_v41, %v253_v40  ;;  %v259_v45 = vmul.f32 %v255_v41, %v255_v41 }
 0x112   :  { %v269_v46 = vmul.f32 %v366_v42, %v260_v43  ;;  %v261_v47 = vadd.f32 %v259_v45, %v257_v44 }
 0x114   :  { %v272_v48 = vsel %vm271_vm1, %v269_v46, 0.0  ;;  %v270_v49 = vmul.f32 %v366_v42, %v261_v47 }
 0x115   :  { %273 = vadd.xlane.f32.xlu1 %v272_v48 }
 0x116   :  { %v275_v50 = vsel %vm271_vm1, %v270_v49, 0.0 }
 0x119   :  { %276 = vadd.xlane.f32.xlu1 %v275_v50 }
 0x1a2   :  { %v274_v52 = vpop.xlane.xlu1 %273 }
 0x1a3   :  { %v280_v54 = vmul.f32 %v278_v51, %v274_v52 }
 0x1a5   :  { %v283_v57 = vsel %vm282_vm2, %v280_v54, 0.0 }
 0x1a6   :  { %v277_v55 = vpop.xlane.xlu1 %276 }
 0x1a7   :  { %v281_v56 = vmul.f32 %v279_v53, %v277_v55 }
 0x1a9   :  { %v284_v58 = vsel %vm282_vm2, %v281_v56, 0.0 }
 0x1aa   :  { %v285_v59 = vadd.f32 %v284_v58, %v283_v57 }
 0x1ac   :  { %286 = vadd.xlane.f32.xlu0 %v285_v59 }
 0x239   :  { %v287_v60 = vpop.xlane.xlu0 %286 }
 0x23a   :  { %v288_v61 = vrot.slane %v287_v60, 4 }
 0x23c   :  { %v289_v62 = vadd.f32 %v288_v61, %v287_v60 }
 0x23e   :  { %v290_v63 = vrot.slane %v289_v62, 2 }
 0x240   :  { %v291_v0 = vadd.f32 %v290_v63, %v289_v62 }
 0x242   :  { %v292_v1 = vrot.slane %v291_v0, 1 }
 0x244   :  { %v293_v2 = vadd.f32 %v292_v1, %v291_v0 }
 0x246   :  { %375 = vpush %v293_v2 }
 0x277   :  { %s376_s23 = spop %375 }
 0x278   :  { %s306_s26 = smul.f32 %s376_s23, %s298_s22 }
 0x27a   :  { %v307_v6 = vstv %s306_s26 }
 0x27b   :  { %v308_v7 = vsel %vm305_vm5, %v307_v6, 0.0 }
 0x27c   :  { %309 = vst [vmem:[#allocation6] sm:$0xff] %v308_v7 }
 0x27d   :  { %412 = shalt.err (!%p409_p13)
}
 0x27e   :  { %s413_s28 = scalar_lea.hbm %s554_s9, 128 }
 0x27f   :  { %p414_p0 = scmp.ne.s32.totalorder %s554_s9, %s413_s28  ;;  %p417_p1 = scmp.lt.u32.totalorder %s413_s28, %s554_s9 }
 0x281   :  { %p419_p2 = pnand %p417_p1, %p414_p0 }
 0x283   :  { %422 = shalt.err (!%p419_p2)
}
 0x284   :  { %319 = dma.vmem_to_hbm [thread:$0]  %s317_s25, 128, %s554_s9, [#allocation7]  }
 0x285   :  { %425 = dma.done.wait [#allocation7], 128  }
 0x286   :  { %426 = vsyncadd [#allocation7], 4294967168 }
 0x287   :  { %323 = vsyncpa [#allocation7], 1 }

</bundles_post_ra>
